<compile_context>
chip_gen: v7x
topology: tpu7x:2x2x1
jax: 0.10.0
libtpu: 0.0.40
codegen_flags: <defaults>
</compile_context>

<pallas_src>
import functools
import math

import jax
import jax.numpy as jnp
from jax.experimental import pallas as pl
from jax.experimental.pallas import tpu as pltpu


def _round_up(x, m):
    return ((x + m - 1) // m) * m


def _vmem_limit_bytes():
    phys = 64 * 1024 * 1024
    try:
        phys = int(getattr(pltpu.get_tpu_info(), "vmem_capacity_bytes", phys))
    except Exception:
        pass
    # ~3/4 of physical VMEM, capped at 96 MiB: 48 MiB on v7x (64 MiB VMEM),
    # 96 MiB on v5e / v6e (128 MiB VMEM).
    return min(phys * 3 // 4, 96 * 1024 * 1024)


# ---------------------------------------------------------------------------
# Kernels.  Grid order is (M, B, L, K).
#   x_ref: (1, TK, TL)   w_ref: (TM, TK)   b_ref: (TM, 1) f32
#   o_ref: (1, TM, TL)   acc_ref (optional): (TM, TL) f32
# ---------------------------------------------------------------------------

def _kernel_single_k(x_ref, w_ref, b_ref, o_ref, *, precision, compute_dtype):
    # Single K tile: one MXU pass, bias add, store.  No accumulator / pl.when.
    xv = x_ref[0].astype(compute_dtype)
    acc = jnp.dot(w_ref[...], xv,
                  preferred_element_type=jnp.float32, precision=precision)
    o_ref[0] = (acc + b_ref[...]).astype(o_ref.dtype)


def _kernel_multi_k_f32_out(x_ref, w_ref, b_ref, o_ref, *, precision,
                            compute_dtype):
    # Tiled K, float32 output: accumulate directly into the K-resident output
    # block (saves the f32 scratch and the final copy/cast).
    k = pl.program_id(3)
    xv = x_ref[0].astype(compute_dtype)
    part = jnp.dot(w_ref[...], xv,
                   preferred_element_type=jnp.float32, precision=precision)

    @pl.when(k == 0)
    def _():
        o_ref[0] = b_ref[...] + part

    @pl.when(k > 0)
    def _():
        o_ref[0] += part


def _kernel_multi_k_acc(x_ref, w_ref, b_ref, o_ref, acc_ref, *, precision,
                        compute_dtype):
    # Tiled K, non-f32 output: f32 scratch accumulator, cast once at the end.
    k = pl.program_id(3)

    @pl.when(k == 0)
    def _():
        acc_ref[...] = jnp.zeros_like(acc_ref)

    xv = x_ref[0].astype(compute_dtype)
    acc_ref[...] += jnp.dot(w_ref[...], xv,
                            preferred_element_type=jnp.float32,
                            precision=precision)

    @pl.when(k == pl.num_programs(3) - 1)
    def _():
        o_ref[0] = (acc_ref[...] + b_ref[...]).astype(o_ref.dtype)


# ---------------------------------------------------------------------------
# Wrapper
# ---------------------------------------------------------------------------

def transposed_linear(x, weight, bias=None, *, compute_dtype=None,
                      precision=None, tm_max=512, tk_max=1024, tl_max=None):
    """y = einsum('b u ..., v u -> b v ...', x, weight) + bias[:, None, ...]."""
    B, D_in = x.shape[0], x.shape[1]
    spatial = x.shape[2:]
    L = int(math.prod(spatial)) if spatial else 1
    D_out = weight.shape[0]
    out_dtype = jnp.dtype(x.dtype)

    comp_dtype = jnp.dtype(compute_dtype) if compute_dtype is not None else jnp.dtype(x.dtype)
    comp_bytes = comp_dtype.itemsize
    out_bytes = out_dtype.itemsize

    # dtype-aware channel rounding (sublane packing).
    sub = {4: 8, 2: 16, 1: 32}.get(comp_bytes, 8)

    # ---- tile selection ----------------------------------------------------
    # M (output channels)
    TM = _round_up(D_out, sub) if D_out <= tm_max else _round_up(tm_max, sub)
    D_out_p = _round_up(D_out, TM)
    n_m = D_out_p // TM

    # K (input channels): collapse to a single tile whenever it fits so the
    # (TM, D_in) weight slab is DMA'd once per m tile and stays VMEM-resident
    # across b/l; a tiled K must be a 128-multiple (lane dim of the w block).
    D_in_s = _round_up(D_in, sub)
    if D_in_s <= tk_max:
        TK = D_in_s
    else:
        TK = _round_up(min(tk_max, 1024), 128)
    D_in_p = _round_up(D_in, TK)
    n_k = D_in_p // TK

    # L (flattened spatial / lane axis): 128-multiple, large by default so the
    # ~0.35us per-grid-step overhead is amortized.
    if tl_max is None:
        tl_max = 4096 if comp_bytes <= 2 else 2048
    tl_max = max(128, (tl_max // 128) * 128)
    TL = _round_up(L, 128) if L <= tl_max else tl_max

    # Give the parallel grid axes >= 2 steps when possible (v7x has 2 TCs).
    if B * n_m * pl.cdiv(L, TL) < 2 and L > 128:
        TL = _round_up(-(-L // 2), 128)

    # Cast x to the compute dtype in HBM only when it is re-read for several
    # M tiles; otherwise cast per-tile inside the kernel (saves an HBM pass).
    wrapper_cast_x = (comp_dtype != jnp.dtype(x.dtype)) and (n_m > 1)
    x_pass_bytes = comp_bytes if wrapper_cast_x else jnp.dtype(x.dtype).itemsize

    use_scratch = (n_k > 1) and (out_dtype != jnp.dtype(jnp.float32))

    # Shrink TL (then TM) until the in-flight VMEM footprint fits the budget.
    vmem_limit = _vmem_limit_bytes()
    budget = int(vmem_limit * 0.85)

    def _footprint(tm, tl):
        f = (2 * TK * tl * x_pass_bytes      # x, double-buffered
             + 2 * tm * TK * comp_bytes      # weight, double-buffered
             + 2 * tm * tl * out_bytes       # output, double-buffered
             + 2 * tm * 4)                   # bias
        if use_scratch:
            f += tm * tl * 4
        return f

    while _footprint(TM, TL) > budget and TL > 128:
        TL = max(128, _round_up(TL // 2, 128))
    while _footprint(TM, TL) > budget and TM > sub:
        TM = max(sub, _round_up(TM // 2, sub))
        D_out_p = _round_up(D_out, TM)
        n_m = D_out_p // TM

    L_p = _round_up(L, TL)
    n_l = L_p // TL
    grid = (n_m, B, n_l, n_k)

    # ---- operand prep (guard every extra HBM pass) ---------------------------
    x_flat = x.reshape(B, D_in, L)            # contiguous flatten: no copy
    if wrapper_cast_x:
        x_flat = x_flat.astype(comp_dtype)
    if D_in_p != D_in or L_p != L:
        x_flat = jnp.pad(x_flat, ((0, 0), (0, D_in_p - D_in), (0, L_p - L)))

    w_p = weight.astype(comp_dtype)
    if D_out_p != D_out or D_in_p != D_in:
        w_p = jnp.pad(w_p, ((0, D_out_p - D_out), (0, D_in_p - D_in)))

    if bias is None:
        b_p = jnp.zeros((D_out_p, 1), jnp.float32)
    else:
        b_p = bias.astype(jnp.float32)
        if D_out_p != D_out:
            b_p = jnp.pad(b_p, (0, D_out_p - D_out))
        b_p = b_p.reshape(D_out_p, 1)

    # ---- kernel selection ----------------------------------------------------
    common = dict(precision=precision, compute_dtype=comp_dtype)
    if n_k == 1:
        kernel = functools.partial(_kernel_single_k, **common)
        scratch = []
    elif out_dtype == jnp.dtype(jnp.float32):
        kernel = functools.partial(_kernel_multi_k_f32_out, **common)
        scratch = []
    else:
        kernel = functools.partial(_kernel_multi_k_acc, **common)
        scratch = [pltpu.VMEM((TM, TL), jnp.float32)]

    # NOTE: if a profile ever shows exposed DMA on the x block, add
    # pipeline_mode=pl.Buffered(3) to the x BlockSpec (costs extra VMEM).
    out_flat = pl.pallas_call(
        kernel,
        out_shape=jax.ShapeDtypeStruct((B, D_out_p, L_p), out_dtype),
        grid_spec=pltpu.PrefetchScalarGridSpec(
            num_scalar_prefetch=0,
            grid=grid,
            in_specs=[
                pl.BlockSpec((1, TK, TL), lambda m, b, l, k: (b, k, l)),
                pl.BlockSpec((TM, TK), lambda m, b, l, k: (m, k)),
                pl.BlockSpec((TM, 1), lambda m, b, l, k: (m, 0)),
            ],
            out_specs=pl.BlockSpec((1, TM, TL), lambda m, b, l, k: (b, m, l)),
            scratch_shapes=scratch,
        ),
        compiler_params=pltpu.CompilerParams(
            dimension_semantics=("parallel", "parallel", "parallel", "arbitrary"),
            vmem_limit_bytes=vmem_limit,
        ),
    )(x_flat, w_p, b_p)

    out = out_flat[:, :D_out, :L]
    return out.reshape(B, D_out, *spatial)


def init_params(key, d_input, d_output):
    # kaiming_uniform_(a=sqrt(5)) on (d_output, d_input):
    #   bound = sqrt(6 / ((1 + a^2) * fan_in)) = 1 / sqrt(d_input)
    kw, kb = jax.random.split(key)
    bound = 1.0 / math.sqrt(d_input)
    weight = jax.random.uniform(kw, (d_output, d_input), jnp.float32, -bound, bound)
    bias = jax.random.uniform(kb, (d_output,), jnp.float32, -bound, bound)
    return weight, bias


if __name__ == "__main__":
    key = jax.random.PRNGKey(0)
    k_x, k_p, k_x2, k_p2 = jax.random.split(key, 4)

    # --- primary small shape: (B, D, H, W) = (2, 4, 16, 16), D_out = 8 -------
    B, D_in, H, W = 2, 4, 16, 16
    D_out = 8
    x = jax.random.normal(k_x, (B, D_in, H, W), jnp.float32)
    weight, bias = init_params(k_p, D_in, D_out)
    y_ref = jnp.einsum('buhw,vu->bvhw', x, weight) + bias[None, :, None, None]

    # default (fast) f32 path: MXU-default precision
    y = jax.block_until_ready(transposed_linear(x, weight, bias))
    assert y.shape == (B, D_out, H, W)
    assert jnp.allclose(y, y_ref, atol=5e-2, rtol=5e-2)

    # validation path: exact-ish accumulation behind an opt-in precision flag
    y_hi = jax.block_until_ready(
        transposed_linear(x, weight, bias, precision=jax.lax.Precision.HIGHEST))
    assert jnp.allclose(y_hi, y_ref, atol=1e-5, rtol=1e-5)

    # bf16-compute path (MXU-native, f32 accumulation)
    y_bf = jax.block_until_ready(
        transposed_linear(x, weight, bias, compute_dtype=jnp.bfloat16))
    assert y_bf.shape == (B, D_out, H, W)
    assert jnp.allclose(y_bf, y_ref, atol=1e-1, rtol=1e-1)

    # --- odd shapes (exercise channel/lane padding + B == 1) ------------------
    x2 = jax.random.normal(k_x2, (1, 4, 5), jnp.float32)
    w2, b2 = init_params(k_p2, 4, 3)
    y2 = jax.block_until_ready(transposed_linear(x2, w2, b2))
    y2_ref = jnp.einsum('bul,vu->bvl', x2, w2) + b2[None, :, None]
    assert y2.shape == (1, 3, 5)
    assert jnp.allclose(y2, y2_ref, atol=5e-2, rtol=5e-2)

    # --- force a tiled-K reduction (exercises the accumulating kernel path) ---
    k_x3, k_p3 = jax.random.split(k_p2)
    x3 = jax.random.normal(k_x3, (1, 256, 8, 16), jnp.float32)
    w3, b3 = init_params(k_p3, 256, 16)
    y3 = jax.block_until_ready(transposed_linear(x3, w3, b3, tk_max=128))
    y3_ref = jnp.einsum('buhw,vu->bvhw', x3, w3) + b3[None, :, None, None]
    assert y3.shape == (1, 16, 8, 16)
    assert jnp.allclose(y3, y3_ref, atol=5e-2, rtol=5e-2)

    print("KERNEL_OK")
</pallas_src>

<mosaic_0001>
module attributes {stable_mosaic.version = 11 : i64} {
  func.func @_kernel_single_k(%arg0: i32, %arg1: i32, %arg2: i32, %arg3: i32, %arg4: memref<1x8x256xf32, #tpu.memory_space<vmem>>, %arg5: memref<8x8xf32, #tpu.memory_space<vmem>>, %arg6: memref<8x1xf32, #tpu.memory_space<vmem>>, %arg7: memref<1x8x256xf32, #tpu.memory_space<vmem>>) attributes {dimension_semantics = [#tpu.dimension_semantics<parallel>, #tpu.dimension_semantics<parallel>, #tpu.dimension_semantics<parallel>, #tpu.dimension_semantics<arbitrary>], iteration_bounds = array<i64: 1, 2, 1, 1>, scalar_prefetch = 0 : i64, scratch_operands = 0 : i64, tpu.core_type = #tpu.core_type<tc>, window_params = [{transform_indices = @transform_0, window_bounds = array<i64: 1, 8, 256>}, {transform_indices = @transform_1, window_bounds = array<i64: 8, 8>}, {transform_indices = @transform_2, window_bounds = array<i64: 8, 1>}, {transform_indices = @transform_3, window_bounds = array<i64: 1, 8, 256>}]} {
    %c0 = arith.constant 0 : index
    %c0_0 = arith.constant 0 : index
    %c0_1 = arith.constant 0 : index
    %0 = vector.load %arg4[%c0, %c0_0, %c0_1] : memref<1x8x256xf32, #tpu.memory_space<vmem>>, vector<1x8x256xf32>
    %1 = vector.shape_cast %0 : vector<1x8x256xf32> to vector<8x256xf32>
    %c0_2 = arith.constant 0 : index
    %c0_3 = arith.constant 0 : index
    %2 = vector.load %arg5[%c0_2, %c0_3] : memref<8x8xf32, #tpu.memory_space<vmem>>, vector<8x8xf32>
    %cst = arith.constant dense<0.000000e+00> : vector<8x256xf32>
    %3 = tpu.matmul %2, %1, %cst {dimension_numbers = #tpu.dot_dimension_numbers<[1], [0], [0], [1], [0, 0, 1, 1], [], []>} : vector<8x8xf32>, vector<8x256xf32>, vector<8x256xf32> -> vector<8x256xf32>
    %c0_4 = arith.constant 0 : index
    %c0_5 = arith.constant 0 : index
    %4 = vector.load %arg6[%c0_4, %c0_5] : memref<8x1xf32, #tpu.memory_space<vmem>>, vector<8x1xf32>
    %5 = vector.broadcast %4 : vector<8x1xf32> to vector<8x256xf32>
    %6 = arith.addf %3, %5 : vector<8x256xf32>
    %c0_6 = arith.constant 0 : index
    %c0_7 = arith.constant 0 : index
    %c0_8 = arith.constant 0 : index
    %7 = vector.load %arg7[%c0_6, %c0_7, %c0_8] : memref<1x8x256xf32, #tpu.memory_space<vmem>>, vector<1x8x256xf32>
    %8 = vector.shape_cast %7 : vector<1x8x256xf32> to vector<8x256xf32>
    %9 = vector.shape_cast %6 : vector<8x256xf32> to vector<1x8x256xf32>
    tpu.vector_store %arg7[%c0_6, %c0_7, %c0_8], %9 {strides = array<i32>} : memref<1x8x256xf32, #tpu.memory_space<vmem>>, vector<1x8x256xf32>,
    return
  }
  func.func @transform_0(%arg0: i32, %arg1: i32, %arg2: i32, %arg3: i32) -> (i32, i32, i32) {
    %c0_i32 = arith.constant 0 : i32
    return %arg1, %arg3, %arg2 : i32, i32, i32
  }
  func.func @transform_1(%arg0: i32, %arg1: i32, %arg2: i32, %arg3: i32) -> (i32, i32) {
    %c0_i32 = arith.constant 0 : i32
    return %arg0, %arg3 : i32, i32
  }
  func.func @transform_2(%arg0: i32, %arg1: i32, %arg2: i32, %arg3: i32) -> (i32, i32) {
    %c0_i32 = arith.constant 0 : i32
    %c0_i32_0 = arith.constant 0 : i32
    return %arg0, %c0_i32 : i32, i32
  }
  func.func @transform_3(%arg0: i32, %arg1: i32, %arg2: i32, %arg3: i32) -> (i32, i32, i32) {
    %c0_i32 = arith.constant 0 : i32
    return %arg1, %arg0, %arg2 : i32, i32, i32
  }
}

</mosaic_0001>

<bundles_post_ra>
// kernel: tpu_custom_call.1
= control target key start
LH: loop header
LB: loop body
LE: loop exit
PB: predicated region body
PF: predicated region fallthrough
CT: control target
= control target key end

     0   :  { %8 = vsyncpa [#allocation3], 0  ;;  %s905_s0 = inlined_call_operand.hbm [shape: f32[2,8,256], index: 0, kind: input, shape index: {}]   ;;  %s906_s1 = inlined_call_operand.vmem [shape: f32[8,8], index: 1, kind: input, shape index: {}]   ;;  %s907_s2 = inlined_call_operand.vmem [shape: f32[8,1], index: 2, kind: input, shape index: {}]   ;;  %s908_s3 = inlined_call_operand.hbm [shape: f32[2,8,256], index: 3, kind: output, shape index: {}]  }
   0x1   :  { %10 = vsyncpa [#allocation3 + $0x1], 0 }
   0x2   :  { %11 = vsyncpa [#allocation4], 0 }
   0x3   :  { %13 = vsyncpa [#allocation4 + $0x1], 0  ;;  %s727_s12 = smov 0   ;;  %s729_s13 = smov 0  }
   0x4   :  { %s731_s14 = smov 0   ;;  %s733_s15 = smov 0  }
   0x5   :  { %s735_s16 = smov 0   ;;  %s737_s17 = smov 0  }
   0x6 LB: > { %s504_s18 = sadd.s32 4294967295, %s701_s17   ;;  %s505_s19 = sadd.s32 4294967294, %s701_s17   ;;  %s701_s17 = sphi %s737_s17, %s19_s17   ;;  %s697_s16 = sphi %s735_s16, %s924_s16   ;;  %s693_s15 = sphi %s733_s15, %s923_s15   ;;  %s689_s14 = sphi %s731_s14, %s922_s14   ;;  %s685_s13 = sphi %s729_s13, %s921_s13   ;;  %s681_s12 = sphi %s727_s12, %s920_s12  }
   0x7   : > { %s41_s20 = sadd.s32 1, %s697_s16  ;;  %s56_s21 = sadd.s32 1, %s689_s14 }
   0x8   : > { %p43_p0 = scmp.ge.s32.totalorder %s41_s20, 2  ;;  %p63_p1 = scmp.ne.s32.totalorder %s689_s14, %s685_s13 }
   0x9   : > { %p64_p2 = scmp.eq.s32.totalorder %s701_s17, 0  ;;  %p69_p3 = scmp.ne.s32.totalorder %s685_s13, %s681_s12 }
   0xa   : > { %s926_s20 = smov (%p43_p0, %s41_s20), 0  ;;  %p70_p5 = scmp.eq.s32.totalorder %s504_s18, 0 }
   0xb   : > { %p768_p4 = por %p64_p2, %p63_p1  ;;  %s49_s23 = ssub.s32 %s697_s16, %s926_s20 }
   0xc   : > { %p151_p6 = scmp.eq.s32.totalorder %s504_s18, 1  ;;  %p54_p7 = scmp.eq.s32.totalorder %s49_s23, 0 }
   0xd   : > { %p774_p8 = por %p70_p5, %p69_p3  ;;  %p157_p10 = scmp.eq.s32.totalorder %s505_s19, 1 }
   0xe   : > { %p778_p9 = por %p151_p6, %p63_p1  ;;  %p536_p13 = scmp.lt.s32.totalorder %s701_s17, 2 }
   0xf   : > { %s783_s26 = scalar_select %p54_p7, %s689_s14, %s56_s21  }
  0x10   : > { %s912_s25 = scalar_select %p778_p9, 1, 0 }
  0x11   : > { %p785_p11 = por %p157_p10, %p69_p3  ;;  %s194_s28 = sand.u32 1, %s689_s14  }
  0x12   : > { %s510_s29 = sshll.u32 %s194_s28, 4  ;;  %s522_s30 = sshll.u32 %s697_s16, 8 }
  0x13   : > { %s913_s27 = scalar_select %p785_p11, 1, 0 }
  0x14   : > { %s796_s6 = scalar_lea.hbm %s905_s0, %s522_s30  ;;  %s198_s7 = scalar_lea.vmem [#allocation2], %s510_s29 }
  0x15   : > { %s210_s8 = sshll.u32 %s198_s7, 4  ;;  %p802_p0 = pnand %p536_p13, %p768_p4  ;;  %s798_s8 = int_to_ptr.vmem [resolvable:$true] %s210_s8 }
  0x16   : > { %s195_s10 = scalar_lea.sflag [#allocation3], %s194_s28  ;;  %s589_s11 = scalar_lea.hbm %s796_s6, 256 }
  0x17   : > { %p590_p3 = scmp.ne.s32.totalorder %s796_s6, %s589_s11  ;;  %p591_p5 = pneg %p802_p0 }
  0x18   : > { %s594_s21 = scalar_lea.hbm %s905_s0, 512  ;;  %p595_p4 = scmp.lt.u32.totalorder %s796_s6, %s905_s0 }
  0x19   : > { %p592_p6 = pnand %p591_p5, %p590_p3  ;;  %p596_p10 = scmp.lt.u32.totalorder %s594_s21, %s589_s11 }
  0x1a   : > { %p598_p12 = scmp.lt.u32.totalorder %s589_s11, %s796_s6 }
  0x1b   : > { %p593_p7 = pneg %p592_p6  ;;  %p597_p13 = por %p596_p10, %p595_p4 }
  0x1d   : > { %p599_p1 = por %p598_p12, %p597_p13 }
  0x1f   : > { %p600_p2 = pnand %p599_p1, %p593_p7 }
  0x21   : > { %603 = shalt.err (!%p600_p2)
}
  0x22   : > { %s604_s28 = scalar_lea.vmem %s798_s8, 256  ;;  %s703_s29 = smov [#allocation2]  }
  0x23   : > { %p605_p3 = scmp.ne.s32.totalorder %s798_s8, %s604_s28  ;;  %s609_s30 = sshll.u32 %s703_s29, 4  ;;  %s610_s30 = int_to_ptr.vmem [resolvable:$false] %s609_s30 }
  0x24   : > { %s611_s4 = scalar_lea.vmem %s610_s30, 512  ;;  %p612_p9 = scmp.lt.s32.totalorder %s798_s8, %s610_s30 }
  0x25   : > { %p607_p6 = pnand %p605_p3, %p591_p5  ;;  %p613_p4 = scmp.lt.s32.totalorder %s611_s4, %s604_s28 }
  0x27   : > { %p608_p11 = pneg %p607_p6  ;;  %p614_p10 = por %p613_p4, %p612_p9 }
  0x29   : > { %p615_p12 = pnand %p614_p10, %p608_p11 }
  0x2b   : > { %618 = shalt.err (!%p615_p12)
}
  0x2c   : > { %531 = dma.hbm_to_vmem [thread:$0]  (!%p802_p0), %s796_s6, 256, %s798_s8, %s195_s10  }
  0x2d   : > { %p915_p1 = scmp.lt.s32.totalorder %s701_s17, 3  ;;  %p916_p2 = scmp.ge.s32.totalorder %s701_s17, 1 }
  0x2f   : > { %p216_p5 = pnand %p916_p2, %p915_p1 }
  0x30   : > { %s838_s5 = sand.u32 (!%p216_p5), 1, %s685_s13  }
  0x31   : > { %219 = sbr.rel (%p216_p5) target bundleno = 290 (0x122), region = 32  ;;  %s514_s7 = sshll.u32 (!%p216_p5), %s838_s5, 4 }
  0x32   : > { %s222_s11 = scalar_lea.sflag (!%p216_p5), [#allocation3], %s838_s5  ;;  %s225_s18 = scalar_lea.vmem (!%p216_p5), [#allocation2], %s514_s7 }
  0x38   : > { %672 = dma.done.wait (%p774_p8), %s222_s11, 256  }
  0x39   : > { %674 = vsyncadd (%p774_p8), %s222_s11, 4294967040  ;;  %v704_v0 = vmov 0.0   ;;  %v705_v1 = vmov 0   ;;  %v273_v2 = vld [vmem:[%s225_s18 + $0x8] sm:$0xff]  ;;  %v272_v3 = vld [vmem:[%s225_s18] sm:$0xff]  ;;  %vm281_vm0 = vcmask 64512  }
  0x3a   : > { %349 = vmatprep.mubr.f32.mxu0 %v704_v0  ;;  %588 = vset.pattern.permute.xlu0 %v705_v1  ;;  %v274_v4 = vld [vmem:[%s906_s1] sm:$0xff]  ;;  %s523_s24 = sshll.u32 %s693_s15, 8  ;;  %s258_s19 = scalar_lea.vmem [#allocation5], %s514_s7 }
  0x3b   : > { %285 = vmatprep.subr.mxu0 %v273_v2  ;;  %v275_v5 = vld [vmem:[%s907_s2] sm:$0xff]  ;;  %s377_s21 = sshll.u32 %s258_s19, 4  ;;  %s856_s28 = scalar_lea.hbm %s908_s3, %s523_s24  ;;  %s858_s21 = int_to_ptr.vmem [resolvable:$true] %s377_s21 }
  0x3c   : > { %286 = vmatpush1.msra.mxu0 %v272_v3  ;;  %278 = vperm.xlu0 %588, %v275_v5   ;;  %s359_s29 = scalar_lea.sflag [#allocation4], %s838_s5  ;;  %s619_s15 = scalar_lea.vmem %s858_s21, 256 }
  0x3d   : > { %516 = vmatmul.mubr.msk.f32.vlgmr.msra.gmra.mrb[0].mxu0 %vm281_vm0, %v274_v4  ;;  %p620_p8 = scmp.ne.s32.totalorder %s858_s21, %s619_s15  ;;  %p917_p9 = scmp.ne.s32.totalorder %s912_s25, 0 }
  0x3e   : > { %s706_s30 = smov [#allocation5]  }
  0x3f   : > { %p621_p11 = pnand %p620_p8, %p917_p9  ;;  %s623_s4 = sshll.u32 %s706_s30, 4  ;;  %s624_s4 = int_to_ptr.vmem [resolvable:$false] %s623_s4 }
  0x40   : > { %s625_s7 = scalar_lea.vmem %s624_s4, 512  ;;  %p626_p7 = scmp.lt.s32.totalorder %s858_s21, %s624_s4 }
  0x41   : > { %p622_p0 = pneg %p621_p11  ;;  %p627_p13 = scmp.lt.s32.totalorder %s625_s7, %s619_s15 }
  0x43   : > { %p628_p3 = por %p627_p13, %p626_p7 }
  0x45   : > { %p629_p6 = pnand %p628_p3, %p622_p0 }
  0xbb   : > { %v279_v6 = vpop.permute.xlu0 %278 }
 0x110   : > { %v351_v7 = vpop.f32.mrb[0].mxu0 }
 0x111   : > { %v352_v8 = vadd.f32 %v351_v7, %v279_v6  ;;  %v353_v9 = vpop.f32.mrb[1].mxu0 }
 0x112   : > { %v354_v10 = vadd.f32 %v353_v9, %v279_v6 }
 0x113   : > { %356 = vst [vmem:[%s258_s19] sm:$0xff] %v352_v8 }
 0x114   : > { %357 = vst [vmem:[%s258_s19 + $0x8] sm:$0xff] %v354_v10 }
 0x115   : > { %632 = shalt.err (!%p629_p6)
}
 0x116   : > { %s633_s5 = scalar_lea.hbm %s856_s28, 256  ;;  %s637_s6 = scalar_lea.hbm %s908_s3, 512 }
 0x117   : > { %p634_p4 = scmp.ne.s32.totalorder %s856_s28, %s633_s5  ;;  %p638_p1 = scmp.lt.u32.totalorder %s856_s28, %s908_s3 }
 0x118   : > { %p639_p2 = scmp.lt.u32.totalorder %s637_s6, %s633_s5  ;;  %p641_p8 = scmp.lt.u32.totalorder %s633_s5, %s856_s28 }
 0x119   : > { %p635_p10 = pnand %p634_p4, %p917_p9 }
 0x11a   : > { %p640_p5 = por %p639_p2, %p638_p1 }
 0x11b   : > { %p636_p12 = pneg %p635_p10 }
 0x11c   : > { %p642_p11 = por %p641_p8, %p640_p5 }
 0x11e   : > { %p643_p0 = pnand %p642_p11, %p636_p12 }
 0x120   : > { %646 = shalt.err (!%p643_p0)
}
 0x121   : > { %526 = dma.vmem_to_hbm [thread:$0]  (%p917_p9), %s858_s21, 256, %s856_s28, %s359_s29  }
 0x122 PF: > { %s389_s10 = sand.u32 1, %s681_s12   ;;  %p918_p7 = scmp.ne.s32.totalorder %s913_s27, 0 }
 0x123   : > { %p919_p13 = scmp.ge.s32.totalorder %s701_s17, 2  ;;  %s390_s24 = scalar_lea.sflag [#allocation4], %s389_s10 }
 0x125   : > { %p533_p3 = pnand %p919_p13, %p918_p7 }
 0x127   : > { %676 = dma.done.wait (!%p533_p3), %s390_s24, 256  }
 0x128   : > { %678 = vsyncadd (!%p533_p3), %s390_s24, 4294967040  ;;  %s19_s17 = sadd.s32 1, %s701_s17   ;;  %s920_s12 = smov %s685_s13 }
 0x129   : > { %p16_p6 = scmp.ge.s32.totalorder %s19_s17, 4   ;;  %s921_s13 = smov %s689_s14 }
 0x12a   : > { %s922_s14 = smov %s783_s26  ;;  %s923_s15 = smov %s697_s16 }
 0x12b   : > { %s924_s16 = smov %s926_s20  ;;  %18 = sbr.rel (!%p16_p6) target bundleno = 6 (0x6), region = 83 }
 0x132   :  { %395 = vsyncpa [#allocation3], 1 }
 0x133   :  { %397 = vsyncpa [#allocation3 + $0x1], 1 }
 0x134   :  { %398 = vsyncpa [#allocation4], 1 }
 0x135   :  { %400 = vsyncpa [#allocation4 + $0x1], 1 }

</bundles_post_ra>
